<compile_context>
chip_gen: v7x
topology: tpu7x:2x2x1
jax: 0.10.0
libtpu: 0.0.40
codegen_flags: <defaults>
</compile_context>

<pallas_src>
import functools

import jax
import jax.numpy as jnp
from jax.experimental import pallas as pl
from jax.experimental.pallas import tpu as pltpu


def _ce_label_smooth_kernel(logits_ref, targets_ref, partial_ref, *,
                            num_classes, epsilon, total_b, tile_b):
    i = pl.program_id(0)

    x = logits_ref[...]                                         # (TB, C), input dtype

    # Per-row max (XLU) on the raw tile; only the (TB, 1) column is upcast to f32.
    m = jnp.max(x, axis=1, keepdims=True).astype(jnp.float32)   # (TB, 1)

    # Target gather via iota-compare on the raw tile (no blanket f32 upcast).
    cls_ids = jax.lax.broadcasted_iota(jnp.int32, x.shape, 1)   # (TB, C)
    sel = jnp.where(cls_ids == targets_ref[...], x, jnp.zeros((), x.dtype))

    if x.dtype == jnp.bfloat16:
        # Offload lane-axis reductions to the otherwise-idle MXU: bf16 * 1.0 with
        # f32 accumulation is exact, and frees VALU/XLU slots on v6e/v7x.
        ones = jnp.ones((num_classes, 1), dtype=x.dtype)
        sum_x = jnp.dot(x, ones, preferred_element_type=jnp.float32)    # (TB, 1)
        tgt_x = jnp.dot(sel, ones, preferred_element_type=jnp.float32)  # (TB, 1)
    else:
        # f32 path: keep exact VALU/XLU sums (default-precision MXU would truncate).
        sum_x = jnp.sum(x, axis=1, keepdims=True).astype(jnp.float32)
        tgt_x = jnp.sum(sel, axis=1, keepdims=True).astype(jnp.float32)

    # exp(x - m): the single full-width f32 temporary; exact f32 lane sum for lse.
    e = jnp.exp(x - m)                                          # (TB, C) f32
    lse = jnp.log(jnp.sum(e, axis=1, keepdims=True))            # (TB, 1)

    # sum_c log_probs[b,:] = sum_x - C*(m + lse);  log_probs[b, t_b] = tgt_x - m - lse
    sum_log_probs = sum_x - num_classes * (m + lse)
    tgt_log_prob = tgt_x - m - lse

    per_row = -((1.0 - epsilon) * tgt_log_prob
                + (epsilon / num_classes) * sum_log_probs)      # (TB, 1)

    # Overhanging rows of the last block (no wrapper-side padding) may contain
    # garbage / Inf / NaN: select them out instead of multiplying by a mask.
    row_ids = jax.lax.broadcasted_iota(jnp.int32, (tile_b, 1), 0) + i * tile_b
    per_row = jnp.where(row_ids < total_b, per_row, 0.0)

    # Unnormalized partial sum for this batch tile (SMEM scalar per grid step).
    partial_ref[0, 0] = jnp.sum(per_row)


def cross_entropy_label_smooth(logits, targets, *, num_classes, epsilon,
                               tile_b=None, vmem_limit_bytes=None):
    """logits: (B, C) f32/bf16; targets: (B,) int class indices. Returns scalar f32 loss."""
    B, C = logits.shape
    assert C == num_classes
    itemsize = jnp.dtype(logits.dtype).itemsize

    # Generation-aware VMEM budget (v7x: 64 MiB physical; v5e/v6e: 128 MiB).
    try:
        vmem_cap = int(pltpu.get_tpu_info().vmem_capacity_bytes)
    except Exception:
        vmem_cap = 64 * 1024 * 1024  # assume the smallest (v7x) if the query fails
    if vmem_cap >= 100 * 1024 * 1024:
        tile_budget, limit_cap = 48 << 20, 64 << 20     # v5e / v6e
    else:
        tile_budget, limit_cap = 32 << 20, 40 << 20     # v7x

    # Per-row VMEM footprint: double-buffered input tile + ~3 f32-equivalent (TB, C)
    # in-kernel temporaries (exp chain, gather/select) + targets (double-buffered).
    per_row_bytes = C * (2 * itemsize + 3 * 4) + 2 * 4

    if tile_b is None:
        tb = tile_budget // per_row_bytes
        tb = max(8, min(2048, (tb // 8) * 8))
        # Keep >= ~4 grid steps when the batch allows it (2 per v7x TensorCore).
        quarter = -(-B // 4)
        cap4 = max(8, (quarter // 8) * 8)
        tile_b = min(tb, cap4, max(8, ((B + 7) // 8) * 8))
    tile_b = max(8, (tile_b // 8) * 8)

    num_tiles = pl.cdiv(B, tile_b)

    # Targets are tiny; just reshape/cast (no logits padding anywhere).
    targets_2d = targets.reshape(B, 1).astype(jnp.int32)

    if vmem_limit_bytes is None:
        need = tile_b * per_row_bytes + (2 << 20)
        vmem_limit_bytes = int(min(max(need, 16 << 20), limit_cap))

    kernel = functools.partial(
        _ce_label_smooth_kernel,
        num_classes=num_classes, epsilon=float(epsilon),
        total_b=B, tile_b=tile_b,
    )

    partials = pl.pallas_call(
        kernel,
        out_shape=jax.ShapeDtypeStruct((num_tiles, 1), jnp.float32),
        grid_spec=pltpu.PrefetchScalarGridSpec(
            num_scalar_prefetch=0,
            grid=(num_tiles,),
            in_specs=[
                pl.BlockSpec((tile_b, C), lambda i: (i, 0)),   # logits tile (last block may overhang)
                pl.BlockSpec((tile_b, 1), lambda i: (i, 0)),   # targets tile
            ],
            out_specs=pl.BlockSpec((1, 1), lambda i: (i, 0),
                                   memory_space=pltpu.MemorySpace.SMEM),
        ),
        compiler_params=pltpu.CompilerParams(
            dimension_semantics=("parallel",),
            vmem_limit_bytes=vmem_limit_bytes,
        ),
    )(logits, targets_2d)

    # Sum per-tile partials in the wrapper; divide by the true batch size once.
    return jnp.sum(partials) / B


def _reference(logits, targets, num_classes, epsilon):
    log_probs = jax.nn.log_softmax(logits.astype(jnp.float32), axis=1)
    one_hot = jax.nn.one_hot(targets, num_classes, dtype=jnp.float32)
    smoothed = (1.0 - epsilon) * one_hot + epsilon / num_classes
    return jnp.sum(jnp.mean(-smoothed * log_probs, axis=0))


if __name__ == "__main__":
    epsilon = 0.1
    key = jax.random.PRNGKey(0)

    # Test 1: small canonical shape, f32, single tile.
    num_classes = 128
    batch = 8
    k1, k2, key = jax.random.split(key, 3)
    logits = jax.random.normal(k1, (batch, num_classes), dtype=jnp.float32)
    targets = jax.random.randint(k2, (batch,), 0, num_classes, dtype=jnp.int32)
    loss = jax.block_until_ready(cross_entropy_label_smooth(
        logits, targets, num_classes=num_classes, epsilon=epsilon))
    ref = _reference(logits, targets, num_classes, epsilon)
    assert jnp.allclose(loss, ref, atol=1e-5, rtol=1e-5), (loss, ref)

    # Test 2: ragged batch (overhanging last block, no padding) + bf16 logits,
    # multi-tile grid exercising the MXU dot-with-ones reductions.
    num_classes2, batch2 = 256, 50
    k1, k2, key = jax.random.split(key, 3)
    logits2 = jax.random.normal(
        k1, (batch2, num_classes2), dtype=jnp.float32).astype(jnp.bfloat16)
    targets2 = jax.random.randint(k2, (batch2,), 0, num_classes2, dtype=jnp.int32)
    loss2 = jax.block_until_ready(cross_entropy_label_smooth(
        logits2, targets2, num_classes=num_classes2, epsilon=epsilon, tile_b=16))
    ref2 = _reference(logits2, targets2, num_classes2, epsilon)
    assert jnp.allclose(loss2, ref2, atol=1e-3, rtol=1e-3), (loss2, ref2)

    # Test 3: class count NOT a multiple of 128 (lane padding path) + bf16,
    # auto tile selection, multi-tile grid.
    num_classes3, batch3 = 1000, 24
    k1, k2, key = jax.random.split(key, 3)
    logits3 = jax.random.normal(
        k1, (batch3, num_classes3), dtype=jnp.float32).astype(jnp.bfloat16)
    targets3 = jax.random.randint(k2, (batch3,), 0, num_classes3, dtype=jnp.int32)
    loss3 = jax.block_until_ready(cross_entropy_label_smooth(
        logits3, targets3, num_classes=num_classes3, epsilon=epsilon))
    ref3 = _reference(logits3, targets3, num_classes3, epsilon)
    assert jnp.allclose(loss3, ref3, atol=1e-3, rtol=1e-3), (loss3, ref3)

    print("KERNEL_OK")
</pallas_src>

<mosaic_0001>
module attributes {stable_mosaic.version = 11 : i64} {
  func.func @_ce_label_smooth_kernel(%arg0: i32, %arg1: memref<8x128xf32, #tpu.memory_space<vmem>>, %arg2: memref<8x1xi32, #tpu.memory_space<vmem>>, %arg3: memref<1x1xf32, #tpu.memory_space<smem>>) attributes {dimension_semantics = [#tpu.dimension_semantics<parallel>], iteration_bounds = array<i64: 1>, scalar_prefetch = 0 : i64, scratch_operands = 0 : i64, tpu.core_type = #tpu.core_type<tc>, window_params = [{transform_indices = @transform_0, window_bounds = array<i64: 8, 128>}, {transform_indices = @transform_1, window_bounds = array<i64: 8, 1>}, {transform_indices = @transform_2, window_bounds = array<i64: 1, 1>}]} {
    %c0 = arith.constant 0 : index
    %c0_0 = arith.constant 0 : index
    %0 = vector.load %arg1[%c0, %c0_0] : memref<8x128xf32, #tpu.memory_space<vmem>>, vector<8x128xf32>
    %cst = arith.constant dense<0xFF800000> : vector<8xf32>
    %1 = vector.multi_reduction <maximumf>, %0, %cst [1] : vector<8x128xf32> to vector<8xf32>
    %2 = vector.shape_cast %1 : vector<8xf32> to vector<8x1xf32>
    %3 = tpu.iota {dimensions = array<i32: 1>} : vector<8x128xi32>
    %c0_1 = arith.constant 0 : index
    %c0_2 = arith.constant 0 : index
    %4 = vector.load %arg2[%c0_1, %c0_2] : memref<8x1xi32, #tpu.memory_space<vmem>>, vector<8x1xi32>
    %5 = vector.broadcast %4 : vector<8x1xi32> to vector<8x128xi32>
    %6 = arith.cmpi eq, %3, %5 : vector<8x128xi32>
    %cst_3 = arith.constant 0.000000e+00 : f32
    %7 = vector.broadcast %cst_3 : f32 to vector<8x128xf32>
    %8 = arith.select %6, %0, %7 : vector<8x128xi1>, vector<8x128xf32>
    %cst_4 = arith.constant dense<0.000000e+00> : vector<8xf32>
    %9 = vector.multi_reduction <add>, %0, %cst_4 [1] : vector<8x128xf32> to vector<8xf32>
    %10 = vector.shape_cast %9 : vector<8xf32> to vector<8x1xf32>
    %cst_5 = arith.constant dense<0.000000e+00> : vector<8xf32>
    %11 = vector.multi_reduction <add>, %8, %cst_5 [1] : vector<8x128xf32> to vector<8xf32>
    %12 = vector.shape_cast %11 : vector<8xf32> to vector<8x1xf32>
    %13 = vector.broadcast %2 : vector<8x1xf32> to vector<8x128xf32>
    %14 = arith.subf %0, %13 : vector<8x128xf32>
    %15 = math.exp %14 : vector<8x128xf32>
    %cst_6 = arith.constant dense<0.000000e+00> : vector<8xf32>
    %16 = vector.multi_reduction <add>, %15, %cst_6 [1] : vector<8x128xf32> to vector<8xf32>
    %17 = vector.shape_cast %16 : vector<8xf32> to vector<8x1xf32>
    %18 = math.log %17 : vector<8x1xf32>
    %19 = arith.addf %2, %18 : vector<8x1xf32>
    %cst_7 = arith.constant 1.280000e+02 : f32
    %20 = vector.broadcast %cst_7 : f32 to vector<8x1xf32>
    %21 = arith.mulf %20, %19 : vector<8x1xf32>
    %22 = arith.subf %10, %21 : vector<8x1xf32>
    %23 = arith.subf %12, %2 : vector<8x1xf32>
    %24 = arith.subf %23, %18 : vector<8x1xf32>
    %cst_8 = arith.constant 0.899999976 : f32
    %25 = vector.broadcast %cst_8 : f32 to vector<8x1xf32>
    %26 = arith.mulf %25, %24 : vector<8x1xf32>
    %cst_9 = arith.constant 7.812500e-04 : f32
    %27 = vector.broadcast %cst_9 : f32 to vector<8x1xf32>
    %28 = arith.mulf %27, %22 : vector<8x1xf32>
    %29 = arith.addf %26, %28 : vector<8x1xf32>
    %cst_10 = arith.constant 0.000000e+00 : f32
    %30 = vector.broadcast %cst_10 : f32 to vector<8x1xf32>
    %31 = arith.subf %30, %29 : vector<8x1xf32>
    %32 = tpu.iota {dimensions = array<i32: 0>} : vector<8x1xi32>
    %c8_i32 = arith.constant 8 : i32
    %33 = arith.muli %arg0, %c8_i32 : i32
    %34 = vector.broadcast %33 : i32 to vector<8x1xi32>
    %35 = arith.addi %32, %34 : vector<8x1xi32>
    %c8_i32_11 = arith.constant 8 : i32
    %36 = vector.broadcast %c8_i32_11 : i32 to vector<8x1xi32>
    %37 = arith.cmpi slt, %35, %36 : vector<8x1xi32>
    %cst_12 = arith.constant 0.000000e+00 : f32
    %38 = vector.broadcast %cst_12 : f32 to vector<8x1xf32>
    %39 = arith.select %37, %31, %38 : vector<8x1xi1>, vector<8x1xf32>
    %40 = vector.shape_cast %39 : vector<8x1xf32> to vector<1x8x1xf32>
    %cst_13 = arith.constant dense<0.000000e+00> : vector<1xf32>
    %41 = vector.multi_reduction <add>, %40, %cst_13 [1, 2] : vector<1x8x1xf32> to vector<1xf32>
    %42 = vector.shape_cast %41 : vector<1xf32> to vector<1x1x1xf32>
    %43 = vector.extract %42[0, 0, 0] : f32 from vector<1x1x1xf32>
    %c0_14 = arith.constant 0 : index
    %c0_15 = arith.constant 0 : index
    %44 = memref.load %arg3[%c0_14, %c0_15] : memref<1x1xf32, #tpu.memory_space<smem>>
    memref.store %43, %arg3[%c0_14, %c0_15] : memref<1x1xf32, #tpu.memory_space<smem>>
    return
  }
  func.func @transform_0(%arg0: i32) -> (i32, i32) {
    %c0_i32 = arith.constant 0 : i32
    %c0_i32_0 = arith.constant 0 : i32
    return %arg0, %c0_i32 : i32, i32
  }
  func.func @transform_1(%arg0: i32) -> (i32, i32) {
    %c0_i32 = arith.constant 0 : i32
    %c0_i32_0 = arith.constant 0 : i32
    return %arg0, %c0_i32 : i32, i32
  }
  func.func @transform_2(%arg0: i32) -> (i32, i32) {
    %c0_i32 = arith.constant 0 : i32
    %c0_i32_0 = arith.constant 0 : i32
    return %arg0, %c0_i32 : i32, i32
  }
}

</mosaic_0001>

<bundles_post_ra>
// kernel: tpu_custom_call.1
= control target key start
LH: loop header
LB: loop body
LE: loop exit
PB: predicated region body
PF: predicated region fallthrough
CT: control target
= control target key end

     0   :  { %s132_s0 = inlined_call_operand.vmem [shape: f32[8,128], index: 0, kind: input, shape index: {}]   ;;  %s133_s1 = inlined_call_operand.vmem [shape: s32[8,1], index: 1, kind: input, shape index: {}]   ;;  %s134_s2 = inlined_call_operand.hbm [shape: f32[1,1], index: 2, kind: output, shape index: {}]  }
   0x1   :  { %v12_v0 = vld [vmem:[%s132_s0] sm:$0xff] }
   0x2   :  { %7 = vsyncpa [#allocation3], 0  ;;  %13 = vmax.xlane.f32.xlu0 %v12_v0  ;;  %v97_v1 = vmov 0   ;;  %v17_v2 = vld [vmem:[%s133_s1] sm:$0xff]  ;;  %v15_v6 = vlaneseq  ;;  %vm50_vm1 = vcmask 7168   ;;  %s85_s14 = scalar_lea.hbm %s134_s2, 16 }
   0x3   :  { %80 = vset.pattern.permute.xlu0 %v97_v1  ;;  %p86_p0 = scmp.ne.s32.totalorder %s134_s2, %s85_s14  ;;  %p89_p1 = scmp.lt.u32.totalorder %s85_s14, %s134_s2 }
   0x4   :  { %v16_v7 = vand.u32 127, %v15_v6 }
   0x5   :  { %p91_p2 = pnand %p89_p1, %p86_p0 }
  0x18   :  { %19 = vperm.xlu0 %80, %v17_v2  }
  0x8f   :  { %v14_v3 = vpop.xlane.xlu0 %13 }
  0x90   :  { %v27_v4 = vsub.f32 %v12_v0, %v14_v3 }
  0x92   :  { %v28_v5 = vmul.f32 1.442695, %v27_v4 }
  0x94   :  { %81 = vpow2.f32 %v28_v5 }
  0x97   :  { %v20_v8 = vpop.permute.xlu0 %19 }
  0x98   :  { %vm21_vm0 = vcmp.eq.s32.totalorder %v16_v7, %v20_v8 }
  0x99   :  { %v22_v10 = vsel %vm21_vm0, %v12_v0, 0.0 }
  0x9e   :  { %v82_v9 = vpop.eup %81 }
  0x9f   :  { %30 = vadd.xlane.f32.xlu1 %v82_v9 }
  0xa3   :  { %25 = vadd.xlane.f32.xlu1 %v22_v10 }
  0xa7   :  { %23 = vadd.xlane.f32.xlu1 %v12_v0 }
 0x12c   :  { %v31_v11 = vpop.xlane.xlu1 %30 }
 0x12d   :  { %83 = vlog2.f32 %v31_v11 }
 0x130   :  { %v26_v13 = vpop.xlane.xlu1 %25 }
 0x131   :  { %v37_v15 = vsub.f32 %v26_v13, %v14_v3 }
 0x134   :  { %v24_v17 = vpop.xlane.xlu1 %23 }
 0x137   :  { %v84_v12 = vpop.eup %83 }
 0x138   :  { %v33_v14 = vmul.f32 0.6931472, %v84_v12 }
 0x13a   :  { %v34_v16 = vadd.f32 %v33_v14, %v14_v3  ;;  %v38_v18 = vsub.f32 %v37_v15, %v33_v14 }
 0x13c   :  { %v35_v19 = vmul.f32 128.0, %v34_v16  ;;  %v39_v21 = vmul.f32 0.9, %v38_v18 }
 0x13e   :  { %v36_v20 = vsub.f32 %v24_v17, %v35_v19 }
 0x140   :  { %v40_v22 = vmul.f32 0.00078125, %v36_v20 }
 0x142   :  { %v41_v23 = vadd.f32 %v40_v22, %v39_v21 }
 0x144   :  { %v42_v24 = vsub.f32 0.0, %v41_v23 }
 0x146   :  { %v51_v25 = vsel %vm50_vm1, %v42_v24, 0.0 }
 0x147   :  { %52 = vadd.xlane.f32.xlu1 %v51_v25 }
 0x1d4   :  { %v53_v26 = vpop.xlane.xlu1 %52 }
 0x1d5   :  { %v54_v27 = vrot.slane %v53_v26, 4 }
 0x1d7   :  { %v55_v28 = vadd.f32 %v54_v27, %v53_v26 }
 0x1d9   :  { %v56_v29 = vrot.slane %v55_v28, 2 }
 0x1db   :  { %v57_v30 = vadd.f32 %v56_v29, %v55_v28 }
 0x1dd   :  { %v58_v31 = vrot.slane %v57_v30, 1 }
 0x1df   :  { %v59_v32 = vadd.f32 %v58_v31, %v57_v30 }
 0x1e1   :  { %76 = vpush %v59_v32 }
 0x212   :  { %s77_s0 = spop %76 }
 0x213   :  { %62 = sst [smem:[#allocation2]] %s77_s0 }
 0x214   :  { %94 = shalt.err (!%p91_p2)
}
 0x215   :  { %s98_s19 = smov [#allocation2]  }
 0x216   :  { %70 = dma.smem_to_hbm %s98_s19, 16, %s134_s2, [#allocation3]  }
 0x217   :  { %95 = dma.done.wait [#allocation3], 16  }
 0x218   :  { %96 = vsyncadd [#allocation3], 4294967280 }
 0x219   :  { %74 = sfence }
 0x21a   :  { %75 = vsyncpa [#allocation3], 1 }

</bundles_post_ra>
